<compile_context>
chip_gen: v5e
topology: v5e:2x2
jax: 0.10.0
libtpu: 0.0.40
codegen_flags: <defaults>
</compile_context>

<pallas_src>
import jax
import jax.numpy as jnp
from jax.experimental import pallas as pl
from jax.experimental.pallas import tpu as pltpu

ORIFEANUM = 16      # OriDataPool consumes exactly 16 channels (5+1+1+1+1+1+1+1+4)
_MAX_LANE_TILE = 2048  # lanes per grid step (multiple of 128); mem-bound roofline saturates ~512-2048


def _seqconvs_kernel(x_ref, w_ref, b_ref, out_ref):
    # x_ref:   (2*Cin, TL)  rows [0:Cin] = even time samples, [Cin:2Cin] = odd
    # w_ref:   (Cout, 2*Cin) fused conv taps [w[:,:,0] | w[:,:,1]]
    # b_ref:   (Cout, 1)
    # out_ref: (16 + Cout, TL)
    x = x_ref[...]
    cin = x.shape[0] // 2
    xe16 = x[:ORIFEANUM, :]
    xo16 = x[cin:cin + ORIFEANUM, :]

    # ---- OriDataPool on the first 16 channels (kernel=2, stride=2) ----
    # (VPU filler under the DMA bottleneck; select chain is cheap on a 16xTL slab.)
    avg = (xe16 + xo16) * 0.5               # AvgPool1d(2,2)
    mx = jnp.maximum(xe16, xo16)            # MaxPool1d(2,2)
    mn = jnp.minimum(xe16, xo16)            # -MaxPool1d(-x)
    ch = jax.lax.broadcasted_iota(jnp.int32, xe16.shape, 0)
    pool = avg                                           # ch 0-4, 10-15: avgpool
    pool = jnp.where(ch == 5, xe16, pool)                # ch 5: x[::2]
    pool = jnp.where((ch == 6) | (ch == 9), xo16, pool)  # ch 6, 9: x[1::2]
    pool = jnp.where(ch == 7, mx, pool)                  # ch 7: maxpool
    pool = jnp.where(ch == 8, mn, pool)                  # ch 8: minpool

    # ---- SeqCssModel ~ Conv1d(Cin, Cout, kernel=2, stride=2) on all channels ----
    # TODO(synk): SeqCssModel definition not provided in source; approximated as
    # a plain strided Conv1d(inputsize, crosssize, kernel_size, stride) + bias.
    # Single fused MXU matmul over the interleaved (2*Cin) contraction axis.
    conv = jnp.dot(w_ref[...], x, preferred_element_type=jnp.float32) + b_ref[...]

    out_ref[0:ORIFEANUM, :] = pool.astype(out_ref.dtype)
    out_ref[ORIFEANUM:, :] = conv.astype(out_ref.dtype)


def seqconvs_forward(x, w, b):
    """x: (T, B, Cin) float32; w: (Cout, Cin, 2); b: (Cout,).

    Returns (T//2, B, 16 + Cout) matching SeqConvs.forward.
    """
    T, B, Cin = x.shape
    assert Cin >= ORIFEANUM, f"inputsize must be >= {ORIFEANUM}, got {Cin}"
    assert T >= 2, "need at least one full (even, odd) time pair"
    T2 = T // 2
    Cout = w.shape[0]
    Ctot = ORIFEANUM + Cout
    L = B * T2  # lane extent of the flattened (channels x batch*time) problem

    # glue: ONE fused XLA transpose (no separate strided even/odd slice copies):
    #   x_cat[p*Cin + c, b*T2 + t] = x[2*t + p, b, c]
    x_cat = (x[:2 * T2]
             .reshape(T2, 2, B, Cin)
             .transpose(1, 3, 2, 0)        # (2, Cin, B, T2)
             .reshape(2 * Cin, L))
    w_cat = jnp.concatenate([w[:, :, 0], w[:, :, 1]], axis=1)  # (Cout, 2*Cin)
    b2 = b.reshape(Cout, 1)

    # Lane tiling: a single full-extent block when small (satisfies the (8,128)
    # rule via "equals the full array dim"), otherwise 2048-lane tiles
    # (multiple of 128 -> unmasked lane-dense stores) with a cdiv grid.
    tile = L if L <= _MAX_LANE_TILE else _MAX_LANE_TILE
    grid = (pl.cdiv(L, tile),)

    # Explicit VMEM budget: double-buffered input + output tiles plus resident
    # weights, with headroom for compiler scratch.  Stays well under the
    # 16/32 MiB scoped defaults and the 64 MiB physical ceiling on v7x.
    blk_bytes = (2 * Cin + Ctot) * tile * 4
    w_bytes = (Cout * 2 * Cin + Cout) * 4
    vmem_limit = int(min(max(4 * blk_bytes + 4 * w_bytes + (2 << 20), 8 << 20),
                         48 << 20))

    out = pl.pallas_call(
        _seqconvs_kernel,
        out_shape=jax.ShapeDtypeStruct((Ctot, L), jnp.float32),
        grid_spec=pltpu.PrefetchScalarGridSpec(
            num_scalar_prefetch=0,
            grid=grid,
            in_specs=[
                # NOTE: raise to pipeline_mode=pl.Buffered(3) if xprof still
                # shows exposed DMA (near-zero compute per tile).
                pl.BlockSpec((2 * Cin, tile), lambda i: (0, i)),
                pl.BlockSpec((Cout, 2 * Cin), lambda i: (0, 0)),
                pl.BlockSpec((Cout, 1), lambda i: (0, 0)),
            ],
            out_specs=pl.BlockSpec((Ctot, tile), lambda i: (0, i)),
        ),
        compiler_params=pltpu.CompilerParams(
            dimension_semantics=("parallel",),
            vmem_limit_bytes=vmem_limit,
        ),
    )(x_cat, w_cat, b2)

    # glue: back to SeqConvs' (T2, B, Ctot) output layout.  (Drop this transpose
    # if the downstream consumer can accept (Ctot, B*T2) directly.)
    return out.reshape(Ctot, B, T2).transpose(2, 1, 0)


def seqconvs_ref(x, w, b):
    """Pure-JAX reference of SeqConvs.forward."""
    T, B, Cin = x.shape
    T2 = T // 2
    xb = jnp.transpose(x, (1, 2, 0))           # (B, Cin, T)
    x1 = xb[:, :ORIFEANUM, :2 * T2]
    pairs = x1.reshape(B, ORIFEANUM, T2, 2)
    avg = pairs.mean(-1)
    mx = pairs.max(-1)
    mn = pairs.min(-1)
    even = x1[:, :, ::2]
    odd = x1[:, :, 1::2]
    pools = [avg[:, k:k + 1] for k in range(5)]
    pools += [even[:, 5:6], odd[:, 6:7], mx[:, 7:8], mn[:, 8:9], odd[:, 9:10],
              avg[:, 10:11], avg[:, 11:12]]
    pools += [avg[:, k:k + 1] for k in range(12, 16)]
    x1p = jnp.concatenate(pools, axis=1)

    xe = xb[:, :, 0:2 * T2:2]
    xo = xb[:, :, 1:2 * T2:2]
    conv = (jnp.einsum('oc,bct->bot', w[:, :, 0], xe)
            + jnp.einsum('oc,bct->bot', w[:, :, 1], xo)
            + b[None, :, None])
    out = jnp.concatenate([x1p, conv], axis=1)  # (B, 16+Cout, T2)
    return jnp.transpose(out, (2, 0, 1))


if __name__ == "__main__":
    T, B = 8, 2
    inputsize, crosssize = 20, 8  # Cin (>= orifeanum=16), Cout of the conv branch

    key = jax.random.PRNGKey(0)
    kx, kw, kb = jax.random.split(key, 3)
    x = jax.random.normal(kx, (T, B, inputsize), dtype=jnp.float32)
    w = jax.random.normal(kw, (crosssize, inputsize, 2), dtype=jnp.float32) * 0.1
    b = jax.random.normal(kb, (crosssize,), dtype=jnp.float32) * 0.1

    out = jax.block_until_ready(seqconvs_forward(x, w, b))
    ref = jax.block_until_ready(seqconvs_ref(x, w, b))

    assert out.shape == (T // 2, B, ORIFEANUM + crosssize), out.shape
    assert jnp.allclose(out, ref, atol=1e-5, rtol=1e-5), \
        float(jnp.max(jnp.abs(out - ref)))
    print("KERNEL_OK")
</pallas_src>

<mosaic_0001>
module attributes {stable_mosaic.version = 11 : i64} {
  func.func @_seqconvs_kernel(%arg0: i32, %arg1: memref<40x8xf32, #tpu.memory_space<vmem>>, %arg2: memref<8x40xf32, #tpu.memory_space<vmem>>, %arg3: memref<8x1xf32, #tpu.memory_space<vmem>>, %arg4: memref<24x8xf32, #tpu.memory_space<vmem>>) attributes {dimension_semantics = [#tpu.dimension_semantics<parallel>], iteration_bounds = array<i64: 1>, scalar_prefetch = 0 : i64, scratch_operands = 0 : i64, tpu.core_type = #tpu.core_type<tc>, window_params = [{transform_indices = @transform_0, window_bounds = array<i64: 40, 8>}, {pipeline_mode = #tpu.pipeline_mode<synchronous>, transform_indices = @transform_1, window_bounds = array<i64: 8, 40>}, {pipeline_mode = #tpu.pipeline_mode<synchronous>, transform_indices = @transform_2, window_bounds = array<i64: 8, 1>}, {transform_indices = @transform_3, window_bounds = array<i64: 24, 8>}]} {
    %c0 = arith.constant 0 : index
    %c0_0 = arith.constant 0 : index
    %0 = vector.load %arg1[%c0, %c0_0] : memref<40x8xf32, #tpu.memory_space<vmem>>, vector<40x8xf32>
    %1 = vector.extract_strided_slice %0 {offsets = [0, 0], sizes = [16, 8], strides = [1, 1]} : vector<40x8xf32> to vector<16x8xf32>
    %2 = vector.extract_strided_slice %0 {offsets = [20, 0], sizes = [16, 8], strides = [1, 1]} : vector<40x8xf32> to vector<16x8xf32>
    %3 = arith.addf %1, %2 : vector<16x8xf32>
    %cst = arith.constant 5.000000e-01 : f32
    %4 = vector.broadcast %cst : f32 to vector<16x8xf32>
    %5 = arith.mulf %3, %4 : vector<16x8xf32>
    %6 = arith.maximumf %1, %2 : vector<16x8xf32>
    %7 = arith.minimumf %1, %2 : vector<16x8xf32>
    %8 = tpu.iota {dimensions = array<i32: 0>} : vector<16x8xi32>
    %c5_i32 = arith.constant 5 : i32
    %9 = vector.broadcast %c5_i32 : i32 to vector<16x8xi32>
    %10 = arith.cmpi eq, %8, %9 : vector<16x8xi32>
    %11 = arith.select %10, %1, %5 : vector<16x8xi1>, vector<16x8xf32>
    %c6_i32 = arith.constant 6 : i32
    %12 = vector.broadcast %c6_i32 : i32 to vector<16x8xi32>
    %13 = arith.cmpi eq, %8, %12 : vector<16x8xi32>
    %c9_i32 = arith.constant 9 : i32
    %14 = vector.broadcast %c9_i32 : i32 to vector<16x8xi32>
    %15 = arith.cmpi eq, %8, %14 : vector<16x8xi32>
    %16 = arith.ori %13, %15 : vector<16x8xi1>
    %17 = arith.select %16, %2, %11 : vector<16x8xi1>, vector<16x8xf32>
    %c7_i32 = arith.constant 7 : i32
    %18 = vector.broadcast %c7_i32 : i32 to vector<16x8xi32>
    %19 = arith.cmpi eq, %8, %18 : vector<16x8xi32>
    %20 = arith.select %19, %6, %17 : vector<16x8xi1>, vector<16x8xf32>
    %c8_i32 = arith.constant 8 : i32
    %21 = vector.broadcast %c8_i32 : i32 to vector<16x8xi32>
    %22 = arith.cmpi eq, %8, %21 : vector<16x8xi32>
    %23 = arith.select %22, %7, %20 : vector<16x8xi1>, vector<16x8xf32>
    %c0_1 = arith.constant 0 : index
    %c0_2 = arith.constant 0 : index
    %24 = vector.load %arg2[%c0_1, %c0_2] : memref<8x40xf32, #tpu.memory_space<vmem>>, vector<8x40xf32>
    %cst_3 = arith.constant dense<0.000000e+00> : vector<8x8xf32>
    %25 = tpu.matmul %24, %0, %cst_3 {dimension_numbers = #tpu.dot_dimension_numbers<[1], [0], [0], [1], [0, 0, 1, 1], [], []>} : vector<8x40xf32>, vector<40x8xf32>, vector<8x8xf32> -> vector<8x8xf32>
    %c0_4 = arith.constant 0 : index
    %c0_5 = arith.constant 0 : index
    %26 = vector.load %arg3[%c0_4, %c0_5] : memref<8x1xf32, #tpu.memory_space<vmem>>, vector<8x1xf32>
    %27 = vector.broadcast %26 : vector<8x1xf32> to vector<8x8xf32>
    %28 = arith.addf %25, %27 : vector<8x8xf32>
    %c0_6 = arith.constant 0 : index
    %c0_7 = arith.constant 0 : index
    %29 = vector.load %arg4[%c0_6, %c0_7] : memref<24x8xf32, #tpu.memory_space<vmem>>, vector<16x8xf32>
    tpu.vector_store %arg4[%c0_6, %c0_7], %23 {strides = array<i32>} : memref<24x8xf32, #tpu.memory_space<vmem>>, vector<16x8xf32>,
    %c16 = arith.constant 16 : index
    %c0_8 = arith.constant 0 : index
    %30 = vector.load %arg4[%c16, %c0_8] : memref<24x8xf32, #tpu.memory_space<vmem>>, vector<8x8xf32>
    tpu.vector_store %arg4[%c16, %c0_8], %28 {strides = array<i32>} : memref<24x8xf32, #tpu.memory_space<vmem>>, vector<8x8xf32>,
    return
  }
  func.func @transform_0(%arg0: i32) -> (i32, i32) {
    %c0_i32 = arith.constant 0 : i32
    %c0_i32_0 = arith.constant 0 : i32
    return %c0_i32, %arg0 : i32, i32
  }
  func.func @transform_1(%arg0: i32) -> (i32, i32) {
    %c0_i32 = arith.constant 0 : i32
    %c0_i32_0 = arith.constant 0 : i32
    %c0_i32_1 = arith.constant 0 : i32
    return %c0_i32, %c0_i32_0 : i32, i32
  }
  func.func @transform_2(%arg0: i32) -> (i32, i32) {
    %c0_i32 = arith.constant 0 : i32
    %c0_i32_0 = arith.constant 0 : i32
    %c0_i32_1 = arith.constant 0 : i32
    return %c0_i32, %c0_i32_0 : i32, i32
  }
  func.func @transform_3(%arg0: i32) -> (i32, i32) {
    %c0_i32 = arith.constant 0 : i32
    %c0_i32_0 = arith.constant 0 : i32
    return %c0_i32, %arg0 : i32, i32
  }
}

</mosaic_0001>

<bundles_post_ra>
// kernel: tpu_custom_call.1
= control target key start
LH: loop header
LB: loop body
LE: loop exit
PB: predicated region body
PF: predicated region fallthrough
CT: control target
= control target key end

     0   :  { %v38_v0 = vlaneseq  ;;  %vm22_vm0 = vcmask 1043456   ;;  %v103_v4 = vmov 0   ;;  %vm68_vm5 = vcmask 326656   ;;  %s154_s0 = inlined_call_operand.vmem [shape: f32[40,8], index: 0, kind: input, shape index: {}]   ;;  %s155_s2 = inlined_call_operand.vmem [shape: f32[8,1], index: 2, kind: input, shape index: {}]   ;;  %s156_s1 = inlined_call_operand.vmem [shape: f32[8,40], index: 1, kind: input, shape index: {}]   ;;  %s157_s3 = inlined_call_operand.vmem [shape: f32[24,8], index: 3, kind: output, shape index: {}]  }
   0x1   :  { %v18_v1 = vld [vmem:[%s154_s0 + $0x20] sm:$0xff]  ;;  %v17_v2 = vld [vmem:[%s154_s0 + $0x18] sm:$0xff]  ;;  %v16_v3 = vld [vmem:[%s154_s0 + $0x10] sm:$0xff]  ;;  %102 = vset.pattern.permute.xlu0 %v103_v4  ;;  %vm92_vm7 = vcmask 64512  }
   0x2   :  { %v26_v5 = vrot.slane %v18_v1, 4  ;;  %83 = vmatpush.msra.mxu0 %v18_v1  ;;  %v24_v6 = vrot.slane %v17_v2, 4  ;;  %v23_v7 = vrot.slane %v16_v3, 4  ;;  %v39_v8 = vshrl.u32 %v38_v0, 7  ;;  %v62_v9 = vld [vmem:[%s155_s2] sm:$0xff]  ;;  %v15_v12 = vld [vmem:[%s154_s0 + $0x8] sm:$0xff] }
   0x3   :  { %v14_v14 = vld [vmem:[%s154_s0] sm:$0xff]  ;;  %65 = vperm.xlu0 %102, %v62_v9  }
   0x4   :  { %v27_v10 = vsel %vm22_vm0, %v24_v6, %v26_v5  ;;  %84 = vmatpush.msra.mxu0 %v17_v2  ;;  %v25_v11 = vsel %vm22_vm0, %v23_v7, %v24_v6  ;;  %v40_v13 = vadd.s32 8, %v39_v8  ;;  %vm41_vm2 = vcmp.eq.s32.totalorder %v39_v8, 5  ;;  %v61_v21 = vld [vmem:[%s156_s1] sm:$0xff] }
   0x5   :  { %v31_v15 = vadd.f32 %v27_v10, %v15_v12  ;;  %v37_v16 = vmin.f32 %v15_v12, %v27_v10  ;;  %v30_v17 = vadd.f32 %v25_v11, %v14_v14  ;;  %v34_v18 = vmax.f32 %v14_v14, %v25_v11 }
   0x6   :  { %85 = vmatpush.msra.mxu0 %v16_v3  ;;  %vm48_vm1 = vcmp.eq.s32.totalorder %v40_v13, 9  ;;  %vm58_vm3 = vcmp.eq.s32.totalorder %v40_v13, 8  ;;  %vm45_vm4 = vcmp.eq.s32.totalorder %v39_v8, 6  ;;  %vm53_vm6 = vcmp.eq.s32.totalorder %v39_v8, 7 }
   0x7   :  { %v33_v19 = vmul.f32 0.5, %v31_v15  ;;  %v32_v20 = vmul.f32 0.5, %v30_v17 }
   0x8   :  { %86 = vmatpush.msra.mxu0 %v15_v12 }
   0x9   :  { %v52_v22 = vsel %vm48_vm1, %v27_v10, %v33_v19  ;;  %v43_v23 = vsel %vm41_vm2, %v14_v14, %v32_v20 }
   0xa   :  { %v60_v24 = vsel %vm58_vm3, %v37_v16, %v52_v22  ;;  %v51_v25 = vsel %vm45_vm4, %v25_v11, %v43_v23  ;;  %87 = vmatpush.msra.mxu0 %v14_v14 }
   0xb   :  { %100 = vmatmul.msk.f32.vlgmr.msra.gmra.mxu0 %vm68_vm5, %v61_v21  ;;  %v55_v26 = vsel %vm53_vm6, %v34_v18, %v51_v25  ;;  %94 = vst.msk [vmem:[%s157_s3 + $0x8] sm:$0xff] %vm92_vm7, %v60_v24 }
   0xc   :  { %93 = vst.msk [vmem:[%s157_s3] sm:$0xff] %vm92_vm7, %v55_v26 }
  0x75   :  { %v66_v27 = vpop.permute.xlu0 %65 }
  0x88   :  { %v89_v28 = vpop.f32.mrf.mxu0 }
  0x89   :  { %v90_v29 = vadd.f32 %v89_v28, %v66_v27 }
  0x8b   :  { %95 = vst.msk [vmem:[%s157_s3 + $0x10] sm:$0xff] %vm92_vm7, %v90_v29 }

</bundles_post_ra>
